<compile_context>
chip_gen: v7x
topology: tpu7x:2x2x1
jax: 0.10.0
libtpu: 0.0.40
codegen_flags: <defaults>
</compile_context>

<pallas_src>
import numpy as np
import jax
import jax.numpy as jnp
from jax.experimental import pallas as pl
from jax.experimental.pallas import tpu as pltpu

IGNORE_INDEX = 255
_LANE = 128


# ---------------------------------------------------------------------------
# bilinear interpolation matrices (align_corners=True), built on host
# ---------------------------------------------------------------------------
def _interp_matrix(out_size, in_size):
    m = np.zeros((out_size, in_size), dtype=np.float32)
    if in_size == 1:
        m[:, 0] = 1.0
        return m
    if out_size == 1:
        m[0, 0] = 1.0
        return m
    scale = (in_size - 1) / (out_size - 1)
    for i in range(out_size):
        src = i * scale
        y0 = min(int(np.floor(src)), in_size - 1)
        y1 = min(y0 + 1, in_size - 1)
        w = src - y0
        m[i, y0] += 1.0 - w
        m[i, y1] += w
    return m


# ---------------------------------------------------------------------------
# VMEM sizing helpers (generation-aware)
# ---------------------------------------------------------------------------
def _vmem_capacity_bytes():
    try:
        return int(pltpu.get_tpu_info().vmem_capacity_bytes)
    except Exception:
        return 64 * 1024 * 1024          # conservative fallback (v7x per-core)


def _vmem_need_bytes(th, c, h_in, w_in, wp):
    bf = 2                               # bf16 bytes
    return int(
        2 * (c * h_in * w_in * bf)       # image block (double-buffered)
        + 2 * (th * h_in * bf)           # Ry row chunk
        + 2 * (w_in * wp * bf)           # Rx^T
        + 2 * (th * wp * 4)              # target chunk (int32)
        + 2 * (1 * 1 * 2 * 4)            # output block
        + h_in * c * wp * bf             # xw scratch (persistent, bf16)
        + th * c * wp * 4                # z (f32)
        + 6 * th * wp * 4                # CE temporaries (m, sexp, pick, ce, ...)
        + c * h_in * wp * 4              # width-pass matmul result (only at i==0)
    )


def _pick_row_tile(h_out, c, h_in, w_in, wp, cap):
    budget = max(cap - (16 << 20), 8 << 20)
    # 512-row chunks on 128 MiB parts (v5e/v6e), 256 on 64 MiB parts (v7x)
    target = 512 if cap >= (96 << 20) else 256
    th = min(((h_out + 7) // 8) * 8, target)
    th = max(8, th)
    while th > 8 and _vmem_need_bytes(th, c, h_in, w_in, wp) > budget:
        th = max(8, ((th // 2) // 8) * 8)
    return th


# ---------------------------------------------------------------------------
# fused resize + cross-entropy kernel
# ---------------------------------------------------------------------------
def _make_fused_kernel(C, H_in, W_in, Wp):
    def kernel(x_ref, ry_ref, rxt_ref, t_ref, out_ref, xw_ref):
        i = pl.program_id(1)   # output-row chunk (sequential per image)

        # ---- width pass: once per image, ONE big (C*H_in, W_in)@(W_in, Wp) matmul,
        #      scattered per channel into lane-aligned slices of the VMEM scratch ----
        @pl.when(i == 0)
        def _width_pass():
            xf = jnp.dot(x_ref[0], rxt_ref[...],
                         preferred_element_type=jnp.float32)       # (C*H_in, Wp) f32
            for cc in range(C):
                xw_ref[:, cc * Wp:(cc + 1) * Wp] = (
                    xf[cc * H_in:(cc + 1) * H_in, :].astype(xw_ref.dtype))

        # ---- height pass: ONE lane-dense matmul, channels batched on lanes ----
        # (TH, H_in) @ (H_in, C*Wp) -> (TH, C*Wp), f32 accumulation
        z = jnp.dot(ry_ref[...], xw_ref[...], preferred_element_type=jnp.float32)

        # ---- cross-entropy with ignore_index over 128-aligned lane blocks of z ----
        t = t_ref[0]                                                # (TH, Wp) int32

        m = z[:, 0:Wp]
        for cc in range(1, C):
            m = jnp.maximum(m, z[:, cc * Wp:(cc + 1) * Wp])

        sexp = jnp.zeros_like(m)
        pick = jnp.zeros_like(m)
        for cc in range(C):
            zc = z[:, cc * Wp:(cc + 1) * Wp]
            sexp = sexp + jnp.exp(zc - m)
            # NOTE: valid labels outside [0, C) (other than IGNORE_INDEX) give
            # pick == 0 -> finite but undefined NLL (same caveat as before).
            pick = pick + jnp.where(t == cc, zc, 0.0)

        validf = (t != IGNORE_INDEX).astype(jnp.float32)
        ce = (m + jnp.log(sexp) - pick) * validf

        # ---- per-image (sum, count) accumulated in the resident output block;
        #      HBM writeback happens once per image when the b block index changes ----
        @pl.when(i == 0)
        def _init_out():
            out_ref[...] = jnp.zeros_like(out_ref)
        out_ref[0, :, 0:1] += jnp.sum(ce, axis=(0, 1), keepdims=True)
        out_ref[0, :, 1:2] += jnp.sum(validf, axis=(0, 1), keepdims=True)

    return kernel


def _fused_resize_ce(pred, target, h_out, w_out):
    """Returns (sum of per-pixel NLL over valid pixels, number of valid pixels)."""
    n, c, h_in, w_in = pred.shape

    # per-channel lane stride padded to a multiple of 128 -> unmasked stores/VPU ops
    wp = ((w_out + _LANE - 1) // _LANE) * _LANE

    cap = _vmem_capacity_bytes()
    th = _pick_row_tile(h_out, c, h_in, w_in, wp, cap)
    rc = -(-h_out // th)                           # cdiv
    h_pad = rc * th

    # interpolation matrices (built in f32, stored as bf16 for the MXU)
    ry = _interp_matrix(h_out, h_in)
    if h_pad != h_out:                             # zero rows -> zero logits, ignored
        ry = np.concatenate(
            [ry, np.zeros((h_pad - h_out, h_in), np.float32)], axis=0)
    rxt = np.zeros((w_in, wp), np.float32)         # zero tail lanes -> zero logits
    rxt[:, :w_out] = _interp_matrix(w_out, w_in).T
    ry = jnp.asarray(ry, dtype=jnp.bfloat16)       # (h_pad, h_in)
    rxt = jnp.asarray(rxt, dtype=jnp.bfloat16)     # (w_in, wp)

    x2d = pred.reshape(n, c * h_in, w_in).astype(jnp.bfloat16)
    t = target.astype(jnp.int32)
    pad_h, pad_w = h_pad - h_out, wp - w_out
    if pad_h or pad_w:                             # int pad only; never pads logits
        t = jnp.pad(t, ((0, 0), (0, pad_h), (0, pad_w)),
                    constant_values=IGNORE_INDEX)

    need = _vmem_need_bytes(th, c, h_in, w_in, wp)
    headroom_cap = max(cap - (16 << 20), 32 << 20)        # e.g. 48 MiB on v7x
    vmem_limit = int(min(max(2 * need, 32 << 20), headroom_cap))

    kernel = _make_fused_kernel(c, h_in, w_in, wp)
    out = pl.pallas_call(
        kernel,
        out_shape=jax.ShapeDtypeStruct((n, 1, 2), jnp.float32),
        grid=(n, rc),
        in_specs=[
            pl.BlockSpec((1, c * h_in, w_in), lambda b, i: (b, 0, 0)),   # image (bf16)
            pl.BlockSpec((th, h_in), lambda b, i: (i, 0)),               # Ry row chunk
            pl.BlockSpec((w_in, wp), lambda b, i: (0, 0)),               # Rx^T (const)
            pl.BlockSpec((1, th, wp), lambda b, i: (b, i, 0)),           # target chunk
        ],
        out_specs=pl.BlockSpec((1, 1, 2), lambda b, i: (b, 0, 0)),       # (sum, count)
        scratch_shapes=[pltpu.VMEM((h_in, c * wp), jnp.bfloat16)],       # width-pass xw
        compiler_params=pltpu.CompilerParams(
            # i axis MUST stay "arbitrary"/sequential: xw scratch written at i==0 is
            # reused for i>0 of the same image. n axis is parallel (megacore on v7x;
            # keep N even there so both TensorCores stay busy).
            dimension_semantics=("parallel", "arbitrary"),
            vmem_limit_bytes=vmem_limit),
    )(x2d, ry, rxt, t)

    # tiny global reduction in glue code (per-prediction mean over valid pixels)
    # NOTE: divides by zero if a target has no valid pixels (matches PyTorch -> nan).
    return jnp.sum(out[:, 0, 0]), jnp.sum(out[:, 0, 1])


# ---------------------------------------------------------------------------
# CriterionAll forward
# ---------------------------------------------------------------------------
def criterion_all(preds, target):
    """preds = [branch0, branch1], each a (list of) NCHW logits; target = [t0, t1] NHW labels."""
    h, w = target[0].shape[1], target[0].shape[2]
    loss = jnp.float32(0.0)
    for branch_preds, branch_target in zip(preds, target):
        branch_list = branch_preds if isinstance(branch_preds, (list, tuple)) else [branch_preds]
        for pred in branch_list:
            s, k = _fused_resize_ce(pred, branch_target, h, w)
            loss = loss + s / k      # mean over valid pixels, per prediction
    return loss


# ---------------------------------------------------------------------------
# pure-JAX f32 reference (same math, no Pallas) for a self-check
# ---------------------------------------------------------------------------
def _ref_criterion(preds, target):
    h, w = target[0].shape[1], target[0].shape[2]
    loss = jnp.float32(0.0)
    for branch_preds, branch_target in zip(preds, target):
        branch_list = branch_preds if isinstance(branch_preds, (list, tuple)) else [branch_preds]
        for pred in branch_list:
            n, c, hi, wi = pred.shape
            ry = jnp.asarray(_interp_matrix(h, hi))
            rx = jnp.asarray(_interp_matrix(w, wi))
            sp = jnp.einsum('oh,nchw,pw->ncop', ry, pred.astype(jnp.float32), rx)
            logp = jax.nn.log_softmax(sp, axis=1)
            t = branch_target
            valid = (t != IGNORE_INDEX)
            t_safe = jnp.where(valid, t, 0)
            nll = -jnp.take_along_axis(logp, t_safe[:, None, :, :], axis=1)[:, 0]
            loss = loss + jnp.sum(jnp.where(valid, nll, 0.0)) / jnp.sum(valid)
    return loss


if __name__ == "__main__":
    key = jax.random.PRNGKey(0)
    k1, k2, k3, k4, k5, k6, k7 = jax.random.split(key, 7)

    N, C, H, W = 2, 8, 16, 16  # target resolution 16x16, 8 classes

    # preds[0] is a list of two scales, preds[1] is a single tensor
    pred0a = jax.random.normal(k1, (N, C, 8, 8), dtype=jnp.float32)
    pred0b = jax.random.normal(k2, (N, C, 16, 16), dtype=jnp.float32)
    pred1 = jax.random.normal(k3, (N, C, 8, 8), dtype=jnp.float32)
    preds = [[pred0a, pred0b], pred1]

    t0 = jax.random.randint(k4, (N, H, W), 0, C, dtype=jnp.int32)
    t0 = jnp.where(jax.random.uniform(k5, (N, H, W)) < 0.1, IGNORE_INDEX, t0)
    t1 = jax.random.randint(k6, (N, H, W), 0, C, dtype=jnp.int32)
    t1 = jnp.where(jax.random.uniform(k7, (N, H, W)) < 0.1, IGNORE_INDEX, t1)
    target = [t0, t1]

    loss = criterion_all(preds, target)
    loss = jax.block_until_ready(loss)

    ref = jax.block_until_ready(_ref_criterion(preds, target))
    # bf16 matmul inputs -> slightly looser tolerance vs the f32 reference
    np.testing.assert_allclose(np.asarray(loss), np.asarray(ref), rtol=2e-2, atol=2e-2)

    print("KERNEL_OK")
</pallas_src>

<mosaic_0001>
module attributes {stable_mosaic.version = 11 : i64} {
  func.func @kernel(%arg0: i32, %arg1: i32, %arg2: memref<1x64x8xbf16, #tpu.memory_space<vmem>>, %arg3: memref<16x8xbf16, #tpu.memory_space<vmem>>, %arg4: memref<8x128xbf16, #tpu.memory_space<vmem>>, %arg5: memref<1x16x128xi32, #tpu.memory_space<vmem>>, %arg6: memref<1x1x2xf32, #tpu.memory_space<vmem>>, %arg7: memref<8x1024xbf16, #tpu.memory_space<vmem>>) attributes {dimension_semantics = [#tpu.dimension_semantics<parallel>, #tpu.dimension_semantics<arbitrary>], iteration_bounds = array<i64: 2, 1>, scalar_prefetch = 0 : i64, scratch_operands = 1 : i64, tpu.core_type = #tpu.core_type<tc>, window_params = [{transform_indices = @transform_0, window_bounds = array<i64: 1, 64, 8>}, {transform_indices = @transform_1, window_bounds = array<i64: 16, 8>}, {pipeline_mode = #tpu.pipeline_mode<synchronous>, transform_indices = @transform_2, window_bounds = array<i64: 8, 128>}, {transform_indices = @transform_3, window_bounds = array<i64: 1, 16, 128>}, {transform_indices = @transform_4, window_bounds = array<i64: 1, 1, 2>}]} {
    %c0_i32 = arith.constant 0 : i32
    %0 = arith.cmpi eq, %arg1, %c0_i32 : i32
    %1 = arith.extui %0 : i1 to i32
    %c0_i32_0 = arith.constant 0 : i32
    %2 = arith.cmpi ne, %1, %c0_i32_0 : i32
    scf.if %2 {
      %c0_33 = arith.constant 0 : index
      %c0_34 = arith.constant 0 : index
      %c0_35 = arith.constant 0 : index
      %130 = vector.load %arg2[%c0_33, %c0_34, %c0_35] : memref<1x64x8xbf16, #tpu.memory_space<vmem>>, vector<1x64x8xbf16>
      %131 = vector.shape_cast %130 : vector<1x64x8xbf16> to vector<64x8xbf16>
      %c0_36 = arith.constant 0 : index
      %c0_37 = arith.constant 0 : index
      %132 = vector.load %arg4[%c0_36, %c0_37] : memref<8x128xbf16, #tpu.memory_space<vmem>>, vector<8x128xbf16>
      %cst_38 = arith.constant dense<0.000000e+00> : vector<64x128xf32>
      %133 = tpu.matmul %131, %132, %cst_38 {dimension_numbers = #tpu.dot_dimension_numbers<[1], [0], [0], [1], [0, 0, 1, 1], [], []>} : vector<64x8xbf16>, vector<8x128xbf16>, vector<64x128xf32> -> vector<64x128xf32>
      %134 = vector.extract_strided_slice %133 {offsets = [0, 0], sizes = [8, 128], strides = [1, 1]} : vector<64x128xf32> to vector<8x128xf32>
      %135 = arith.truncf %134 : vector<8x128xf32> to vector<8x128xbf16>
      %c0_39 = arith.constant 0 : index
      %c0_40 = arith.constant 0 : index
      %136 = vector.load %arg7[%c0_39, %c0_40] : memref<8x1024xbf16, #tpu.memory_space<vmem>>, vector<8x128xbf16>
      tpu.vector_store %arg7[%c0_39, %c0_40], %135 {strides = array<i32>} : memref<8x1024xbf16, #tpu.memory_space<vmem>>, vector<8x128xbf16>,
      %137 = vector.extract_strided_slice %133 {offsets = [8, 0], sizes = [8, 128], strides = [1, 1]} : vector<64x128xf32> to vector<8x128xf32>
      %138 = arith.truncf %137 : vector<8x128xf32> to vector<8x128xbf16>
      %c0_41 = arith.constant 0 : index
      %c128 = arith.constant 128 : index
      %139 = vector.load %arg7[%c0_41, %c128] : memref<8x1024xbf16, #tpu.memory_space<vmem>>, vector<8x128xbf16>
      tpu.vector_store %arg7[%c0_41, %c128], %138 {strides = array<i32>} : memref<8x1024xbf16, #tpu.memory_space<vmem>>, vector<8x128xbf16>,
      %140 = vector.extract_strided_slice %133 {offsets = [16, 0], sizes = [8, 128], strides = [1, 1]} : vector<64x128xf32> to vector<8x128xf32>
      %141 = arith.truncf %140 : vector<8x128xf32> to vector<8x128xbf16>
      %c0_42 = arith.constant 0 : index
      %c256 = arith.constant 256 : index
      %142 = vector.load %arg7[%c0_42, %c256] : memref<8x1024xbf16, #tpu.memory_space<vmem>>, vector<8x128xbf16>
      tpu.vector_store %arg7[%c0_42, %c256], %141 {strides = array<i32>} : memref<8x1024xbf16, #tpu.memory_space<vmem>>, vector<8x128xbf16>,
      %143 = vector.extract_strided_slice %133 {offsets = [24, 0], sizes = [8, 128], strides = [1, 1]} : vector<64x128xf32> to vector<8x128xf32>
      %144 = arith.truncf %143 : vector<8x128xf32> to vector<8x128xbf16>
      %c0_43 = arith.constant 0 : index
      %c384 = arith.constant 384 : index
      %145 = vector.load %arg7[%c0_43, %c384] : memref<8x1024xbf16, #tpu.memory_space<vmem>>, vector<8x128xbf16>
      tpu.vector_store %arg7[%c0_43, %c384], %144 {strides = array<i32>} : memref<8x1024xbf16, #tpu.memory_space<vmem>>, vector<8x128xbf16>,
      %146 = vector.extract_strided_slice %133 {offsets = [32, 0], sizes = [8, 128], strides = [1, 1]} : vector<64x128xf32> to vector<8x128xf32>
      %147 = arith.truncf %146 : vector<8x128xf32> to vector<8x128xbf16>
      %c0_44 = arith.constant 0 : index
      %c512 = arith.constant 512 : index
      %148 = vector.load %arg7[%c0_44, %c512] : memref<8x1024xbf16, #tpu.memory_space<vmem>>, vector<8x128xbf16>
      tpu.vector_store %arg7[%c0_44, %c512], %147 {strides = array<i32>} : memref<8x1024xbf16, #tpu.memory_space<vmem>>, vector<8x128xbf16>,
      %149 = vector.extract_strided_slice %133 {offsets = [40, 0], sizes = [8, 128], strides = [1, 1]} : vector<64x128xf32> to vector<8x128xf32>
      %150 = arith.truncf %149 : vector<8x128xf32> to vector<8x128xbf16>
      %c0_45 = arith.constant 0 : index
      %c640 = arith.constant 640 : index
      %151 = vector.load %arg7[%c0_45, %c640] : memref<8x1024xbf16, #tpu.memory_space<vmem>>, vector<8x128xbf16>
      tpu.vector_store %arg7[%c0_45, %c640], %150 {strides = array<i32>} : memref<8x1024xbf16, #tpu.memory_space<vmem>>, vector<8x128xbf16>,
      %152 = vector.extract_strided_slice %133 {offsets = [48, 0], sizes = [8, 128], strides = [1, 1]} : vector<64x128xf32> to vector<8x128xf32>
      %153 = arith.truncf %152 : vector<8x128xf32> to vector<8x128xbf16>
      %c0_46 = arith.constant 0 : index
      %c768 = arith.constant 768 : index
      %154 = vector.load %arg7[%c0_46, %c768] : memref<8x1024xbf16, #tpu.memory_space<vmem>>, vector<8x128xbf16>
      tpu.vector_store %arg7[%c0_46, %c768], %153 {strides = array<i32>} : memref<8x1024xbf16, #tpu.memory_space<vmem>>, vector<8x128xbf16>,
      %155 = vector.extract_strided_slice %133 {offsets = [56, 0], sizes = [8, 128], strides = [1, 1]} : vector<64x128xf32> to vector<8x128xf32>
      %156 = arith.truncf %155 : vector<8x128xf32> to vector<8x128xbf16>
      %c0_47 = arith.constant 0 : index
      %c896 = arith.constant 896 : index
      %157 = vector.load %arg7[%c0_47, %c896] : memref<8x1024xbf16, #tpu.memory_space<vmem>>, vector<8x128xbf16>
      tpu.vector_store %arg7[%c0_47, %c896], %156 {strides = array<i32>} : memref<8x1024xbf16, #tpu.memory_space<vmem>>, vector<8x128xbf16>,
    } else {
    }
    %c0 = arith.constant 0 : index
    %c0_1 = arith.constant 0 : index
    %3 = vector.load %arg3[%c0, %c0_1] : memref<16x8xbf16, #tpu.memory_space<vmem>>, vector<16x8xbf16>
    %c0_2 = arith.constant 0 : index
    %c0_3 = arith.constant 0 : index
    %4 = vector.load %arg7[%c0_2, %c0_3] : memref<8x1024xbf16, #tpu.memory_space<vmem>>, vector<8x1024xbf16>
    %cst = arith.constant dense<0.000000e+00> : vector<16x1024xf32>
    %5 = tpu.matmul %3, %4, %cst {dimension_numbers = #tpu.dot_dimension_numbers<[1], [0], [0], [1], [0, 0, 1, 1], [], []>} : vector<16x8xbf16>, vector<8x1024xbf16>, vector<16x1024xf32> -> vector<16x1024xf32>
    %c0_4 = arith.constant 0 : index
    %c0_5 = arith.constant 0 : index
    %c0_6 = arith.constant 0 : index
    %6 = vector.load %arg5[%c0_4, %c0_5, %c0_6] : memref<1x16x128xi32, #tpu.memory_space<vmem>>, vector<1x16x128xi32>
    %7 = vector.shape_cast %6 : vector<1x16x128xi32> to vector<16x128xi32>
    %8 = vector.extract_strided_slice %5 {offsets = [0, 0], sizes = [16, 128], strides = [1, 1]} : vector<16x1024xf32> to vector<16x128xf32>
    %9 = vector.extract_strided_slice %5 {offsets = [0, 128], sizes = [16, 128], strides = [1, 1]} : vector<16x1024xf32> to vector<16x128xf32>
    %10 = arith.maximumf %8, %9 : vector<16x128xf32>
    %11 = vector.extract_strided_slice %5 {offsets = [0, 256], sizes = [16, 128], strides = [1, 1]} : vector<16x1024xf32> to vector<16x128xf32>
    %12 = arith.maximumf %10, %11 : vector<16x128xf32>
    %13 = vector.extract_strided_slice %5 {offsets = [0, 384], sizes = [16, 128], strides = [1, 1]} : vector<16x1024xf32> to vector<16x128xf32>
    %14 = arith.maximumf %12, %13 : vector<16x128xf32>
    %15 = vector.extract_strided_slice %5 {offsets = [0, 512], sizes = [16, 128], strides = [1, 1]} : vector<16x1024xf32> to vector<16x128xf32>
    %16 = arith.maximumf %14, %15 : vector<16x128xf32>
    %17 = vector.extract_strided_slice %5 {offsets = [0, 640], sizes = [16, 128], strides = [1, 1]} : vector<16x1024xf32> to vector<16x128xf32>
    %18 = arith.maximumf %16, %17 : vector<16x128xf32>
    %19 = vector.extract_strided_slice %5 {offsets = [0, 768], sizes = [16, 128], strides = [1, 1]} : vector<16x1024xf32> to vector<16x128xf32>
    %20 = arith.maximumf %18, %19 : vector<16x128xf32>
    %21 = vector.extract_strided_slice %5 {offsets = [0, 896], sizes = [16, 128], strides = [1, 1]} : vector<16x1024xf32> to vector<16x128xf32>
    %22 = arith.maximumf %20, %21 : vector<16x128xf32>
    %cst_7 = arith.constant 0.000000e+00 : f32
    %23 = vector.broadcast %cst_7 : f32 to vector<16x128xf32>
    %cst_8 = arith.constant 0.000000e+00 : f32
    %24 = vector.broadcast %cst_8 : f32 to vector<16x128xf32>
    %25 = vector.extract_strided_slice %5 {offsets = [0, 0], sizes = [16, 128], strides = [1, 1]} : vector<16x1024xf32> to vector<16x128xf32>
    %26 = arith.subf %25, %22 : vector<16x128xf32>
    %27 = math.exp %26 : vector<16x128xf32>
    %28 = arith.addf %23, %27 : vector<16x128xf32>
    %c0_i32_9 = arith.constant 0 : i32
    %29 = vector.broadcast %c0_i32_9 : i32 to vector<16x128xi32>
    %30 = arith.cmpi eq, %7, %29 : vector<16x128xi32>
    %cst_10 = arith.constant 0.000000e+00 : f32
    %31 = vector.broadcast %cst_10 : f32 to vector<16x128xf32>
    %32 = arith.select %30, %25, %31 : vector<16x128xi1>, vector<16x128xf32>
    %33 = arith.addf %24, %32 : vector<16x128xf32>
    %34 = vector.extract_strided_slice %5 {offsets = [0, 128], sizes = [16, 128], strides = [1, 1]} : vector<16x1024xf32> to vector<16x128xf32>
    %35 = arith.subf %34, %22 : vector<16x128xf32>
    %36 = math.exp %35 : vector<16x128xf32>
    %37 = arith.addf %28, %36 : vector<16x128xf32>
    %c1_i32 = arith.constant 1 : i32
    %38 = vector.broadcast %c1_i32 : i32 to vector<16x128xi32>
    %39 = arith.cmpi eq, %7, %38 : vector<16x128xi32>
    %cst_11 = arith.constant 0.000000e+00 : f32
    %40 = vector.broadcast %cst_11 : f32 to vector<16x128xf32>
    %41 = arith.select %39, %34, %40 : vector<16x128xi1>, vector<16x128xf32>
    %42 = arith.addf %33, %41 : vector<16x128xf32>
    %43 = vector.extract_strided_slice %5 {offsets = [0, 256], sizes = [16, 128], strides = [1, 1]} : vector<16x1024xf32> to vector<16x128xf32>
    %44 = arith.subf %43, %22 : vector<16x128xf32>
    %45 = math.exp %44 : vector<16x128xf32>
    %46 = arith.addf %37, %45 : vector<16x128xf32>
    %c2_i32 = arith.constant 2 : i32
    %47 = vector.broadcast %c2_i32 : i32 to vector<16x128xi32>
    %48 = arith.cmpi eq, %7, %47 : vector<16x128xi32>
    %cst_12 = arith.constant 0.000000e+00 : f32
    %49 = vector.broadcast %cst_12 : f32 to vector<16x128xf32>
    %50 = arith.select %48, %43, %49 : vector<16x128xi1>, vector<16x128xf32>
    %51 = arith.addf %42, %50 : vector<16x128xf32>
    %52 = vector.extract_strided_slice %5 {offsets = [0, 384], sizes = [16, 128], strides = [1, 1]} : vector<16x1024xf32> to vector<16x128xf32>
    %53 = arith.subf %52, %22 : vector<16x128xf32>
    %54 = math.exp %53 : vector<16x128xf32>
    %55 = arith.addf %46, %54 : vector<16x128xf32>
    %c3_i32 = arith.constant 3 : i32
    %56 = vector.broadcast %c3_i32 : i32 to vector<16x128xi32>
    %57 = arith.cmpi eq, %7, %56 : vector<16x128xi32>
    %cst_13 = arith.constant 0.000000e+00 : f32
    %58 = vector.broadcast %cst_13 : f32 to vector<16x128xf32>
    %59 = arith.select %57, %52, %58 : vector<16x128xi1>, vector<16x128xf32>
    %60 = arith.addf %51, %59 : vector<16x128xf32>
    %61 = vector.extract_strided_slice %5 {offsets = [0, 512], sizes = [16, 128], strides = [1, 1]} : vector<16x1024xf32> to vector<16x128xf32>
    %62 = arith.subf %61, %22 : vector<16x128xf32>
    %63 = math.exp %62 : vector<16x128xf32>
    %64 = arith.addf %55, %63 : vector<16x128xf32>
    %c4_i32 = arith.constant 4 : i32
    %65 = vector.broadcast %c4_i32 : i32 to vector<16x128xi32>
    %66 = arith.cmpi eq, %7, %65 : vector<16x128xi32>
    %cst_14 = arith.constant 0.000000e+00 : f32
    %67 = vector.broadcast %cst_14 : f32 to vector<16x128xf32>
    %68 = arith.select %66, %61, %67 : vector<16x128xi1>, vector<16x128xf32>
    %69 = arith.addf %60, %68 : vector<16x128xf32>
    %70 = vector.extract_strided_slice %5 {offsets = [0, 640], sizes = [16, 128], strides = [1, 1]} : vector<16x1024xf32> to vector<16x128xf32>
    %71 = arith.subf %70, %22 : vector<16x128xf32>
    %72 = math.exp %71 : vector<16x128xf32>
    %73 = arith.addf %64, %72 : vector<16x128xf32>
    %c5_i32 = arith.constant 5 : i32
    %74 = vector.broadcast %c5_i32 : i32 to vector<16x128xi32>
    %75 = arith.cmpi eq, %7, %74 : vector<16x128xi32>
    %cst_15 = arith.constant 0.000000e+00 : f32
    %76 = vector.broadcast %cst_15 : f32 to vector<16x128xf32>
    %77 = arith.select %75, %70, %76 : vector<16x128xi1>, vector<16x128xf32>
    %78 = arith.addf %69, %77 : vector<16x128xf32>
    %79 = vector.extract_strided_slice %5 {offsets = [0, 768], sizes = [16, 128], strides = [1, 1]} : vector<16x1024xf32> to vector<16x128xf32>
    %80 = arith.subf %79, %22 : vector<16x128xf32>
    %81 = math.exp %80 : vector<16x128xf32>
    %82 = arith.addf %73, %81 : vector<16x128xf32>
    %c6_i32 = arith.constant 6 : i32
    %83 = vector.broadcast %c6_i32 : i32 to vector<16x128xi32>
    %84 = arith.cmpi eq, %7, %83 : vector<16x128xi32>
    %cst_16 = arith.constant 0.000000e+00 : f32
    %85 = vector.broadcast %cst_16 : f32 to vector<16x128xf32>
    %86 = arith.select %84, %79, %85 : vector<16x128xi1>, vector<16x128xf32>
    %87 = arith.addf %78, %86 : vector<16x128xf32>
    %88 = vector.extract_strided_slice %5 {offsets = [0, 896], sizes = [16, 128], strides = [1, 1]} : vector<16x1024xf32> to vector<16x128xf32>
    %89 = arith.subf %88, %22 : vector<16x128xf32>
    %90 = math.exp %89 : vector<16x128xf32>
    %91 = arith.addf %82, %90 : vector<16x128xf32>
    %c7_i32 = arith.constant 7 : i32
    %92 = vector.broadcast %c7_i32 : i32 to vector<16x128xi32>
    %93 = arith.cmpi eq, %7, %92 : vector<16x128xi32>
    %cst_17 = arith.constant 0.000000e+00 : f32
    %94 = vector.broadcast %cst_17 : f32 to vector<16x128xf32>
    %95 = arith.select %93, %88, %94 : vector<16x128xi1>, vector<16x128xf32>
    %96 = arith.addf %87, %95 : vector<16x128xf32>
    %c255_i32 = arith.constant 255 : i32
    %97 = vector.broadcast %c255_i32 : i32 to vector<16x128xi32>
    %98 = arith.cmpi ne, %7, %97 : vector<16x128xi32>
    %99 = arith.extui %98 : vector<16x128xi1> to vector<16x128xi32>
    %100 = arith.sitofp %99 : vector<16x128xi32> to vector<16x128xf32>
    %101 = math.log %91 : vector<16x128xf32>
    %102 = arith.addf %22, %101 : vector<16x128xf32>
    %103 = arith.subf %102, %96 : vector<16x128xf32>
    %104 = arith.mulf %103, %100 : vector<16x128xf32>
    %c0_i32_18 = arith.constant 0 : i32
    %105 = arith.cmpi eq, %arg1, %c0_i32_18 : i32
    %106 = arith.extui %105 : i1 to i32
    %c0_i32_19 = arith.constant 0 : i32
    %107 = arith.cmpi ne, %106, %c0_i32_19 : i32
    scf.if %107 {
      %cst_33 = arith.constant 0.000000e+00 : f32
      %130 = vector.broadcast %cst_33 : f32 to vector<1x1x2xf32>
      %c0_34 = arith.constant 0 : index
      %c0_35 = arith.constant 0 : index
      %c0_36 = arith.constant 0 : index
      %131 = vector.load %arg6[%c0_34, %c0_35, %c0_36] : memref<1x1x2xf32, #tpu.memory_space<vmem>>, vector<1x1x2xf32>
      tpu.vector_store %arg6[%c0_34, %c0_35, %c0_36], %130 {strides = array<i32>} : memref<1x1x2xf32, #tpu.memory_space<vmem>>, vector<1x1x2xf32>,
    } else {
    }
    %c0_20 = arith.constant 0 : index
    %c0_21 = arith.constant 0 : index
    %c0_22 = arith.constant 0 : index
    %108 = vector.load %arg6[%c0_20, %c0_21, %c0_22] : memref<1x1x2xf32, #tpu.memory_space<vmem>>, vector<1x1x1xf32>
    %109 = vector.shape_cast %108 : vector<1x1x1xf32> to vector<1x1xf32>
    %110 = vector.shape_cast %104 : vector<16x128xf32> to vector<1x16x128xf32>
    %cst_23 = arith.constant dense<0.000000e+00> : vector<1xf32>
    %111 = vector.multi_reduction <add>, %110, %cst_23 [1, 2] : vector<1x16x128xf32> to vector<1xf32>
    %112 = vector.shape_cast %111 : vector<1xf32> to vector<1x1x1xf32>
    %113 = vector.extract %112[0, 0, 0] : f32 from vector<1x1x1xf32>
    %114 = vector.broadcast %113 : f32 to vector<1x1xf32>
    %115 = arith.addf %109, %114 : vector<1x1xf32>
    %c0_24 = arith.constant 0 : index
    %c0_25 = arith.constant 0 : index
    %c0_26 = arith.constant 0 : index
    %116 = vector.load %arg6[%c0_24, %c0_25, %c0_26] : memref<1x1x2xf32, #tpu.memory_space<vmem>>, vector<1x1x1xf32>
    %117 = vector.shape_cast %116 : vector<1x1x1xf32> to vector<1x1xf32>
    %118 = vector.shape_cast %115 : vector<1x1xf32> to vector<1x1x1xf32>
    tpu.vector_store %arg6[%c0_24, %c0_25, %c0_26], %118 {strides = array<i32>} : memref<1x1x2xf32, #tpu.memory_space<vmem>>, vector<1x1x1xf32>,
    %c0_27 = arith.constant 0 : index
    %c0_28 = arith.constant 0 : index
    %c1 = arith.constant 1 : index
    %119 = vector.load %arg6[%c0_27, %c0_28, %c1] : memref<1x1x2xf32, #tpu.memory_space<vmem>>, vector<1x1x1xf32>
    %120 = vector.shape_cast %119 : vector<1x1x1xf32> to vector<1x1xf32>
    %121 = vector.shape_cast %100 : vector<16x128xf32> to vector<1x16x128xf32>
    %cst_29 = arith.constant dense<0.000000e+00> : vector<1xf32>
    %122 = vector.multi_reduction <add>, %121, %cst_29 [1, 2] : vector<1x16x128xf32> to vector<1xf32>
    %123 = vector.shape_cast %122 : vector<1xf32> to vector<1x1x1xf32>
    %124 = vector.extract %123[0, 0, 0] : f32 from vector<1x1x1xf32>
    %125 = vector.broadcast %124 : f32 to vector<1x1xf32>
    %126 = arith.addf %120, %125 : vector<1x1xf32>
    %c0_30 = arith.constant 0 : index
    %c0_31 = arith.constant 0 : index
    %c1_32 = arith.constant 1 : index
    %127 = vector.load %arg6[%c0_30, %c0_31, %c1_32] : memref<1x1x2xf32, #tpu.memory_space<vmem>>, vector<1x1x1xf32>
    %128 = vector.shape_cast %127 : vector<1x1x1xf32> to vector<1x1xf32>
    %129 = vector.shape_cast %126 : vector<1x1xf32> to vector<1x1x1xf32>
    tpu.vector_store %arg6[%c0_30, %c0_31, %c1_32], %129 {strides = array<i32>} : memref<1x1x2xf32, #tpu.memory_space<vmem>>, vector<1x1x1xf32>,
    return
  }
  func.func @transform_0(%arg0: i32, %arg1: i32) -> (i32, i32, i32) {
    %c0_i32 = arith.constant 0 : i32
    %c0_i32_0 = arith.constant 0 : i32
    %c0_i32_1 = arith.constant 0 : i32
    return %arg0, %c0_i32, %c0_i32_0 : i32, i32, i32
  }
  func.func @transform_1(%arg0: i32, %arg1: i32) -> (i32, i32) {
    %c0_i32 = arith.constant 0 : i32
    %c0_i32_0 = arith.constant 0 : i32
    return %arg1, %c0_i32 : i32, i32
  }
  func.func @transform_2(%arg0: i32, %arg1: i32) -> (i32, i32) {
    %c0_i32 = arith.constant 0 : i32
    %c0_i32_0 = arith.constant 0 : i32
    %c0_i32_1 = arith.constant 0 : i32
    return %c0_i32, %c0_i32_0 : i32, i32
  }
  func.func @transform_3(%arg0: i32, %arg1: i32) -> (i32, i32, i32) {
    %c0_i32 = arith.constant 0 : i32
    %c0_i32_0 = arith.constant 0 : i32
    return %arg0, %arg1, %c0_i32 : i32, i32, i32
  }
  func.func @transform_4(%arg0: i32, %arg1: i32) -> (i32, i32, i32) {
    %c0_i32 = arith.constant 0 : i32
    %c0_i32_0 = arith.constant 0 : i32
    %c0_i32_1 = arith.constant 0 : i32
    return %arg0, %c0_i32, %c0_i32_0 : i32, i32, i32
  }
}

</mosaic_0001>

<bundles_post_ra>
// kernel: tpu_custom_call.1
= control target key start
LH: loop header
LB: loop body
LE: loop exit
PB: predicated region body
PF: predicated region fallthrough
CT: control target
= control target key end

     0   :  { %9 = vsyncpa [#allocation4], 0  ;;  %s1482_s0 = inlined_call_operand.vmem [shape: bf16[2,64,8], index: 0, kind: input, shape index: {}]   ;;  %s1483_s1 = inlined_call_operand.vmem [shape: bf16[16,8], index: 1, kind: input, shape index: {}]   ;;  %s1484_s2 = inlined_call_operand.vmem [shape: bf16[8,128], index: 2, kind: input, shape index: {}]   ;;  %s1485_s3 = inlined_call_operand.vmem [shape: s32[2,16,128], index: 3, kind: input, shape index: {}]   ;;  %s1486_s4 = inlined_call_operand.hbm [shape: f32[2,1,2], index: 4, kind: output, shape index: {}]  }
   0x1   :  { %11 = vsyncpa [#allocation4 + $0x1], 0  ;;  %s1216_s15 = smov 0   ;;  %s1218_s16 = smov 0  }
   0x2   :  { %s1220_s17 = smov 0   ;;  %s1222_s18 = smov 0  }
   0x3   :  { %s1224_s19 = smov 0   ;;  %s1226_s20 = smov 0  }
   0x4 LB: > { %s917_s21 = sadd.s32 4294967295, %s1186_s20   ;;  %s918_s22 = sadd.s32 4294967294, %s1186_s20   ;;  %s1186_s20 = sphi %s1226_s20, %s17_s20   ;;  %s1182_s19 = sphi %s1224_s19, %s1493_s19   ;;  %s1178_s18 = sphi %s1222_s18, %s1492_s18   ;;  %s1174_s17 = sphi %s1220_s17, %s1491_s17   ;;  %s1170_s16 = sphi %s1218_s16, %s1490_s16   ;;  %s1166_s15 = sphi %s1216_s15, %s1489_s15  }
   0x5   : > { %s29_s23 = sadd.s32 1, %s1182_s19  ;;  %s137_s24 = sadd.s32 1, %s1174_s17 }
   0x6   : > { %p31_p0 = scmp.ge.s32.totalorder %s29_s23, 2  ;;  %p147_p1 = scmp.ne.s32.totalorder %s1174_s17, %s1170_s16 }
   0x7   : > { %p148_p2 = scmp.eq.s32.totalorder %s917_s21, 1  ;;  %p153_p3 = scmp.ne.s32.totalorder %s1170_s16, %s1166_s15 }
   0x8   : > { %s1495_s23 = smov (%p31_p0, %s29_s23), 0  ;;  %p154_p5 = scmp.eq.s32.totalorder %s918_s22, 1 }
   0x9   : > { %p1256_p4 = por %p148_p2, %p147_p1  ;;  %s134_s26 = ssub.s32 %s1182_s19, %s1495_s23 }
   0xa   : > { %p922_p6 = scmp.ge.s32.totalorder %s1186_s20, 1  ;;  %p135_p7 = scmp.eq.s32.totalorder %s134_s26, 0 }
   0xb   : > { %p1263_p8 = por %p154_p5, %p153_p3  ;;  %p205_p9 = scmp.lt.s32.totalorder %s1186_s20, 3 }
   0xc   : > { %s1269_s28 = scalar_select %p135_p7, %s1174_s17, %s137_s24  }
   0xd   : > { %p206_p10 = pnand %p922_p6, %p205_p9 }
   0xe   : > { %v278_v0 = vld [vmem:[%s1484_s2] sm:$0xf] (!%p206_p10)  ;;  %vm312_vm0 = vcmask (!%p206_p10), 1043456   ;;  %p244_p11 = scmp.lt.s32.totalorder (!%p206_p10), %s1178_s18, 1  ;;  %vm299_vm1 = vcmask (!%p206_p10), 64512   ;;  %v1188_v6 = vmov (!%p206_p10), 0  }
   0xf   : > { %209 = sbr.rel (%p206_p10) target bundleno = 766 (0x2fe), region = 36  ;;  %1005 = vmatprep.subr.msk.bf16.mxu0 (!%p206_p10), %vm312_vm0, %v278_v0  ;;  %v314_v1 = vsel (!%p206_p10), %vm312_vm0, %v278_v0, 0  ;;  %489 = vmatprep.mubr.bf16.mxu1 (!%p206_p10), %v1188_v6  ;;  %v1071_v16 = vld [vmem:[%s1483_s1] sm:$0xff] (!%p206_p10)   ;;  %s242_s22 = sand.u32 (!%p206_p10), 1, %s1170_s16  }
  0x10   : > { %996 = vmatpush3.bf16.msra.mxu0 (!%p206_p10), %v314_v1  ;;  %s1421_s24 = scalar_lea.vmem (!%p206_p10), [#allocation3], %s242_s22  ;;  %s954_s30 = sshll.u32 (!%p206_p10), %s1178_s18, 4 }
  0x11   : > { %s1432_s8 = scalar_lea.hbm (!%p206_p10), %s1486_s4, %s954_s30 }
  0x16   : > { %s1278_s5 = scalar_select %p244_p11, %s1178_s18, 1 }
  0x17   : > { %s1190_s18 = smov [#allocation3]  }
  0x18   : > { %s957_s6 = sshll.u32 %s1278_s5, 5  ;;  %s958_s12 = sshll.u32 %s1278_s5, 4 }
  0x19   : > { %s248_s9 = scalar_lea.vmem %s1482_s0, %s957_s6  ;;  %s263_s21 = scalar_lea.vmem %s1485_s3, %s958_s12 }
  0x1a   : > { %v1067_v2 = vld [vmem:[%s248_s9] sm:$0xff]   ;;  %v1068_v3 = vld [vmem:[%s248_s9 + $0x8] sm:$0xff]   ;;  %v1069_v4 = vld [vmem:[%s248_s9 + $0x10] sm:$0xff]   ;;  %s821_s5 = sshll.u32 %s1421_s24, 4  ;;  %s1112_s11 = sshll.u32 %s1190_s18, 4  ;;  %s1434_s5 = int_to_ptr.vmem [resolvable:$true] %s821_s5  ;;  %s1113_s11 = int_to_ptr.vmem [resolvable:$false] %s1112_s11 }
  0x1b   : > { %997 = vmatprep.mubr.msk.bf16.mxu0 %vm299_vm1, %v1067_v2  ;;  %v1070_v5 = vld [vmem:[%s248_s9 + $0x18] sm:$0xff]   ;;  %v1307_v28 = vld [vmem:[%s263_s21] sm:$0xff]  ;;  %v1309_v29 = vld [vmem:[%s263_s21 + $0x8] sm:$0xff]  ;;  %s809_s9 = scalar_lea.sflag [#allocation4], %s242_s22  ;;  %s1108_s10 = scalar_lea.vmem %s1434_s5, 16 }
  0x1c   : > { %998 = vmatmul.mubr.msk.bf16.vlgmr.msra.gmra.mrb[0].mxu0 %vm299_vm1, %v1068_v3  ;;  %vm653_vm2 = vcmp.eq.s32.totalorder %v1307_v28, 0  ;;  %vm667_vm3 = vcmp.eq.s32.totalorder %v1307_v28, 1  ;;  %vm654_vm4 = vcmp.eq.s32.totalorder %v1309_v29, 0  ;;  %vm668_vm5 = vcmp.eq.s32.totalorder %v1309_v29, 1  ;;  %p1109_p12 = scmp.ne.s32.totalorder %s1434_s5, %s1108_s10  ;;  %s1114_s12 = scalar_lea.vmem %s1113_s11, 32 }
  0x1d   : > { %1001 = vmatprep.mubr.msk.bf16.mxu0 %vm299_vm1, %v1069_v4  ;;  %vm681_vm6 = vcmp.eq.s32.totalorder %v1307_v28, 2  ;;  %vm709_vm7 = vcmp.eq.s32.totalorder %v1307_v28, 4  ;;  %vm695_vm8 = vcmp.eq.s32.totalorder %v1307_v28, 3  ;;  %vm723_vm9 = vcmp.eq.s32.totalorder %v1307_v28, 5  ;;  %p1115_p1 = scmp.lt.s32.totalorder %s1434_s5, %s1113_s11  ;;  %p1116_p2 = scmp.lt.s32.totalorder %s1114_s12, %s1108_s10 }
  0x1e   : > { %vm682_vm10 = vcmp.eq.s32.totalorder %v1309_v29, 2  ;;  %vm696_vm11 = vcmp.eq.s32.totalorder %v1309_v29, 3  ;;  %vm710_vm12 = vcmp.eq.s32.totalorder %v1309_v29, 4  ;;  %vm724_vm13 = vcmp.eq.s32.totalorder %v1309_v29, 5  ;;  %p1110_p13 = pnand %p1109_p12, %p1256_p4 }
  0x1f   : > { %vm737_vm14 = vcmp.eq.s32.totalorder %v1307_v28, 6  ;;  %vm751_vm15 = vcmp.eq.s32.totalorder %v1307_v28, 7  ;;  %p1117_p3 = por %p1116_p2, %p1115_p1 }
  0x20   : > { %p1111_p0 = pneg %p1110_p13 }
  0x22   : > { %p1118_p5 = pnand %p1117_p3, %p1111_p0 }
  0x24   : > { %1002 = vmatmul.mubr.msk.bf16.gmra.mrb[4].mxu0 %vm299_vm1, %v1070_v5 }
  0x25   : > { %575 = vmatprep.mubr.bf16.mxu0 %v1188_v6 }
  0xef   : > { %v999_v7 = vpop.f32.mrb[0].mxu0 }
  0xf0   : > { %v350_v8 = vpop.f32.mrb[1].mxu0  ;;  %v984_v13 = vpack.c.bf16 %v999_v7, %v999_v7 }
  0xf1   : > { %v982_v9 = vpack.c.bf16 %v350_v8, %v350_v8  ;;  %v1000_v10 = vpop.f32.mrb[2].mxu0 }
  0xf2   : > { %v353_v11 = vpop.f32.mrb[3].mxu0  ;;  %v985_v14 = vpack.c.bf16 %v1000_v10, %v1000_v10  ;;  %v440_v19 = vsel %vm312_vm0, %v984_v13, 0 }
  0xf3   : > { %v983_v12 = vpack.c.bf16 %v353_v11, %v353_v11  ;;  %v434_v15 = vsel %vm312_vm0, %v982_v9, 0 }
  0xf5   : > { %944 = vmatprep.subr.msk.bf16.mxu1 %vm312_vm0, %v983_v12 }
  0xf6   : > { %458 = vmatpush1.bf16.msra.mxu1 %v434_v15 }
  0xf7   : > { %v1003_v17 = vpop.f32.mrb[4].mxu0  ;;  %946 = vmatprep.subr.msk.bf16.mxu1 %vm312_vm0, %v985_v14 }
  0xf8   : > { %v366_v18 = vpop.f32.mrb[5].mxu0  ;;  %v988_v26 = vpack.c.bf16 %v1003_v17, %v1003_v17 }
  0xf9   : > { %v986_v20 = vpack.c.bf16 %v366_v18, %v366_v18  ;;  %v1004_v21 = vpop.f32.mrb[6].mxu0  ;;  %945 = vmatmul.mubr.msk.bf16.vlgmr.msra.gmra.mrb[0].mxu1 %vm299_vm1, %v1071_v16 }
  0xfa   : > { %v989_v22 = vpack.c.bf16 %v1004_v21, %v1004_v21  ;;  %v369_v23 = vpop.f32.mrb[7].mxu0  ;;  %501 = vmatpush1.bf16.msra.mxu1 %v440_v19  ;;  %532 = vmatprep.mubr.bf16.mxu1 %v1188_v6  ;;  %v452_v27 = vsel %vm312_vm0, %v988_v26, 0 }
  0xfb   : > { %v446_v24 = vsel %vm312_vm0, %v986_v20, 0  ;;  %v987_v25 = vpack.c.bf16 %v369_v23, %v369_v23 }
  0xfc   : > { %950 = vmatprep.subr.msk.bf16.mxu1 %vm312_vm0, %v989_v22 }
  0xfd   : > { %948 = vmatprep.subr.msk.bf16.mxu0 %vm312_vm0, %v987_v25  ;;  %vm738_vm0 = vcmp.eq.s32.totalorder %v1309_v29, 6 }
  0xfe   : > { %544 = vmatpush1.bf16.msra.mxu0 %v446_v24 }
 0x101   : > { %947 = vmatmul.mubr.msk.bf16.vlgmr.msra.gmra.mrb[4].mxu1 %vm299_vm1, %v1071_v16  ;;  %949 = vmatmul.mubr.msk.bf16.vlgmr.msra.gmra.mrb[8].mxu0 %vm299_vm1, %v1071_v16 }
 0x102   : > { %587 = vmatpush1.bf16.msra.mxu1 %v452_v27  ;;  %618 = vmatprep.mubr.bf16.mxu1 %v1188_v6 }
 0x109   : > { %951 = vmatmul.mubr.msk.bf16.vlgmr.msra.gmra.mrb[8].mxu1 %vm299_vm1, %v1071_v16  ;;  %vm752_vm1 = vcmp.eq.s32.totalorder %v1309_v29, 7 }
 0x1cc   : > { %v1313_v30 = vpop.f32.mrb[0].mxu1 }
 0x1cd   : > { %v655_v31 = vsel %vm653_vm2, %v1313_v30, 0.0  ;;  %v1317_v32 = vpop.f32.mrb[1].mxu1  ;;  %vm757_vm2 = vcmp.ne.s32.totalorder %v1307_v28, 255 }
 0x1ce   : > { %v631_v33 = vmax.f32 %v1313_v30, %v1317_v32  ;;  %v669_v34 = vsel %vm667_vm3, %v1317_v32, 0.0  ;;  %v1323_v35 = vpop.f32.mrb[2].mxu1  ;;  %vm758_vm3 = vcmp.ne.s32.totalorder %v1309_v29, 255 }
 0x1cf   : > { %v671_v36 = vadd.f32 %v669_v34, %v655_v31  ;;  %v656_v37 = vsel %vm654_vm4, %v1323_v35, 0.0  ;;  %v1326_v38 = vpop.f32.mrb[3].mxu1  ;;  %vm776_vm4 = vcmask 8192  }
 0x1d0   : > { %v632_v39 = vmax.f32 %v1323_v35, %v1326_v38  ;;  %v670_v40 = vsel %vm668_vm5, %v1326_v38, 0.0  ;;  %vm791_vm5 = vcmask 0  }
 0x1d1   : > { %v672_v41 = vadd.f32 %v670_v40, %v656_v37 }
 0x1d4   : > { %v1335_v42 = vpop.f32.mrb[4].mxu1  ;;  %v1339_v43 = vpop.f32.mrb[8].mxu0 }
 0x1d5   : > { %v633_v44 = vmax.f32 %v631_v33, %v1335_v42  ;;  %v683_v45 = vsel %vm681_vm6, %v1335_v42, 0.0  ;;  %v1344_v46 = vpop.f32.mrb[5].mxu1  ;;  %v711_v47 = vsel %vm709_vm7, %v1339_v43, 0.0  ;;  %v1347_v48 = vpop.f32.mrb[9].mxu0  ;;  %vm806_vm6 = vcmask 8200  }
 0x1d6   : > { %v685_v49 = vadd.f32 %v683_v45, %v671_v36  ;;  %v697_v50 = vsel %vm695_vm8, %v1344_v46, 0.0  ;;  %v538_v51 = vpop.f32.mrb[6].mxu1  ;;  %v725_v52 = vsel %vm723_vm9, %v1347_v48, 0.0  ;;  %v1352_v53 = vpop.f32.mrb[10].mxu0 }
 0x1d7   : > { %v635_v54 = vmax.f32 %v633_v44, %v1344_v46  ;;  %v634_v55 = vmax.f32 %v632_v39, %v538_v51  ;;  %v684_v56 = vsel %vm682_vm10, %v538_v51, 0.0  ;;  %v1357_v57 = vpop.f32.mrb[7].mxu1  ;;  %v712_v58 = vsel %vm710_vm12, %v1352_v53, 0.0  ;;  %v1362_v59 = vpop.f32.mrb[11].mxu0 }
 0x1d8   : > { %v699_v60 = vadd.f32 %v697_v50, %v685_v49  ;;  %v686_v61 = vadd.f32 %v684_v56, %v672_v41  ;;  %v698_v62 = vsel %vm696_vm11, %v1357_v57, 0.0  ;;  %v726_v63 = vsel %vm724_vm13, %v1362_v59, 0.0 }
 0x1d9   : > { %v636_v0 = vmax.f32 %v634_v55, %v1357_v57  ;;  %v637_v1 = vmax.f32 %v635_v54, %v1339_v43 }
 0x1da   : > { %v700_v2 = vadd.f32 %v698_v62, %v686_v61  ;;  %v713_v3 = vadd.f32 %v711_v47, %v699_v60 }
 0x1db   : > { %v639_v4 = vmax.f32 %v637_v1, %v1347_v48  ;;  %v638_v5 = vmax.f32 %v636_v0, %v1352_v53 }
 0x1dc   : > { %v727_v6 = vadd.f32 %v725_v52, %v713_v3  ;;  %v714_v7 = vadd.f32 %v712_v58, %v700_v2  ;;  %v620_v8 = vpop.f32.mrb[8].mxu1 }
 0x1dd   : > { %v640_v9 = vmax.f32 %v638_v5, %v1362_v59  ;;  %v641_v10 = vmax.f32 %v639_v4, %v620_v8  ;;  %v739_v11 = vsel %vm737_vm14, %v620_v8, 0.0  ;;  %v622_v12 = vpop.f32.mrb[9].mxu1 }
 0x1de   : > { %v728_v13 = vadd.f32 %v726_v63, %v714_v7  ;;  %v741_v14 = vadd.f32 %v739_v11, %v727_v6  ;;  %v753_v15 = vsel %vm751_vm15, %v622_v12, 0.0  ;;  %v624_v16 = vpop.f32.mrb[10].mxu1 }
 0x1df   : > { %v1377_v17 = vmax.f32 %v641_v10, %v622_v12  ;;  %v642_v18 = vmax.f32 %v640_v9, %v624_v16  ;;  %v740_v19 = vsel %vm738_vm0, %v624_v16, 0.0  ;;  %v626_v20 = vpop.f32.mrb[11].mxu1 }
 0x1e0   : > { %v1379_v21 = vadd.f32 %v753_v15, %v741_v14  ;;  %v742_v22 = vadd.f32 %v740_v19, %v728_v13  ;;  %v754_v23 = vsel %vm752_vm1, %v626_v20, 0.0 }
 0x1e1   : > { %v743_v24 = vsub.f32 %v622_v12, %v1377_v17  ;;  %v1382_v25 = vmax.f32 %v642_v18, %v626_v20  ;;  %v645_v26 = vsub.f32 %v1313_v30, %v1377_v17  ;;  %v659_v27 = vsub.f32 %v1317_v32, %v1377_v17 }
 0x1e2   : > { %v1388_v31 = vadd.f32 %v754_v23, %v742_v22  ;;  %v673_v33 = vsub.f32 %v1335_v42, %v1377_v17  ;;  %v687_v34 = vsub.f32 %v1344_v46, %v1377_v17  ;;  %v701_v36 = vsub.f32 %v1339_v43, %v1377_v17 }
 0x1e3   : > { %v744_v37 = vsub.f32 %v626_v20, %v1382_v25  ;;  %v646_v39 = vsub.f32 %v1323_v35, %v1382_v25  ;;  %v647_v30 = vmul.f32 1.442695, %v645_v26  ;;  %v660_v32 = vsub.f32 %v1326_v38, %v1382_v25 }
 0x1e4   : > { %v674_v40 = vsub.f32 %v538_v51, %v1382_v25  ;;  %v661_v44 = vmul.f32 1.442695, %v659_v27  ;;  %v688_v42 = vsub.f32 %v1357_v57, %v1382_v25  ;;  %v675_v46 = vmul.f32 1.442695, %v673_v33 }
 0x1e5   : > { %v649_v41 = vmul.f32 1.442695, %v646_v39  ;;  %v663_v45 = vmul.f32 1.442695, %v660_v32  ;;  %1072 = vpow2.f32 %v647_v30  ;;  %v702_v47 = vsub.f32 %v1352_v53, %v1382_v25 }
 0x1e6   : > { %v677_v43 = vmul.f32 1.442695, %v674_v40  ;;  %v715_v35 = vsub.f32 %v1347_v48, %v1377_v17  ;;  %v716_v38 = vsub.f32 %v1362_v59, %v1382_v25  ;;  %v729_v49 = vsub.f32 %v620_v8, %v1377_v17 }
 0x1e7   : > { %1074 = vpow2.f32 %v649_v41  ;;  %v689_v50 = vmul.f32 1.442695, %v687_v34  ;;  %v730_v51 = vsub.f32 %v624_v16, %v1382_v25  ;;  %v691_v52 = vmul.f32 1.442695, %v688_v42 }
 0x1e8   : > { %1076 = vpow2.f32 %v661_v44  ;;  %v703_v54 = vmul.f32 1.442695, %v701_v36  ;;  %v705_v55 = vmul.f32 1.442695, %v702_v47  ;;  %v717_v53 = vmul.f32 1.442695, %v715_v35 }
 0x1e9   : > { %1078 = vpow2.f32 %v663_v45  ;;  %v719_v56 = vmul.f32 1.442695, %v716_v38  ;;  %v731_v48 = vmul.f32 1.442695, %v729_v49  ;;  %v733_v57 = vmul.f32 1.442695, %v730_v51 }
 0x1ea   : > { %1080 = vpow2.f32 %v675_v46  ;;  %v745_v59 = vmul.f32 1.442695, %v743_v24  ;;  %v747_v61 = vmul.f32 1.442695, %v744_v37  ;;  %v1189_v32 = vmov 0.0  }
 0x1eb   : > { %1082 = vpow2.f32 %v677_v43  ;;  %v952_v40 = vsel %vm757_vm2, 1.0, %v1189_v32  ;;  %v953_v44 = vsel %vm758_vm3, 1.0, %v1189_v32  ;;  %777 = vst.msk [vmem:[%s1421_s24] sm:$0x1] %vm776_vm4, %v1189_v32 }
 0x1ec   : > { %1084 = vpow2.f32 %v689_v50  ;;  %v794_v47 = vadd.f32 %v953_v44, %v952_v40 }
 0x1ed   : > { %1086 = vpow2.f32 %v691_v52 }
 0x1ee   : > { %1088 = vpow2.f32 %v703_v54 }
 0x1ef   : > { %1090 = vpow2.f32 %v705_v55  ;;  %v1073_v58 = vpop.eup %1072 }
 0x1f0   : > { %1092 = vpow2.f32 %v717_v53 }
 0x1f1   : > { %v1075_v60 = vpop.eup %1074  ;;  %1094 = vpow2.f32 %v719_v56 }
 0x1f2   : > { %v1077_v62 = vpop.eup %1076  ;;  %1096 = vpow2.f32 %v731_v48  ;;  %v778_v56 = vld [vmem:[%s1421_s24] sm:$0x1] }
 0x1f3   : > { %v1079_v63 = vpop.eup %1078  ;;  %v665_v0 = vadd.f32 %v1077_v62, %v1073_v58  ;;  %1098 = vpow2.f32 %v733_v57 }
 0x1f4   : > { %v1081_v1 = vpop.eup %1080  ;;  %1100 = vpow2.f32 %v745_v59  ;;  %v666_v2 = vadd.f32 %v1079_v63, %v1075_v60 }
 0x1f5   : > { %v1083_v3 = vpop.eup %1082  ;;  %1102 = vpow2.f32 %v747_v61  ;;  %v679_v4 = vadd.f32 %v1081_v1, %v665_v0 }
 0x1f6   : > { %v1085_v5 = vpop.eup %1084  ;;  %v680_v6 = vadd.f32 %v1083_v3, %v666_v2 }
 0x1f7   : > { %v1087_v7 = vpop.eup %1086  ;;  %v693_v8 = vadd.f32 %v1085_v5, %v679_v4 }
 0x1f8   : > { %v1089_v9 = vpop.eup %1088  ;;  %v694_v10 = vadd.f32 %v1087_v7, %v680_v6 }
 0x1f9   : > { %v1091_v11 = vpop.eup %1090  ;;  %v707_v12 = vadd.f32 %v1089_v9, %v693_v8 }
 0x1fa   : > { %v1093_v13 = vpop.eup %1092  ;;  %v708_v14 = vadd.f32 %v1091_v11, %v694_v10 }
 0x1fb   : > { %v1095_v15 = vpop.eup %1094  ;;  %v721_v16 = vadd.f32 %v1093_v13, %v707_v12 }
 0x1fc   : > { %v1097_v18 = vpop.eup %1096  ;;  %v722_v19 = vadd.f32 %v1095_v15, %v708_v14 }
 0x1fd   : > { %v1099_v20 = vpop.eup %1098  ;;  %v735_v22 = vadd.f32 %v1097_v18, %v721_v16 }
 0x1fe   : > { %v1101_v23 = vpop.eup %1100  ;;  %v736_v24 = vadd.f32 %v1099_v20, %v722_v19 }
 0x1ff   : > { %v1103_v26 = vpop.eup %1102  ;;  %v749_v27 = vadd.f32 %v1101_v23, %v735_v22 }
 0x200   : > { %v750_v33 = vadd.f32 %v1103_v26, %v736_v24 }
 0x201   : > { %1104 = vlog2.f32 %v749_v27 }
 0x202   : > { %1106 = vlog2.f32 %v750_v33 }
 0x20b   : > { %v1105_v34 = vpop.eup %1104 }
 0x20c   : > { %v1107_v36 = vpop.eup %1106  ;;  %v764_v37 = vmul.f32 0.6931472, %v1105_v34 }
 0x20d   : > { %v766_v39 = vmul.f32 0.6931472, %v1107_v36 }
 0x20e   : > { %v767_v30 = vadd.f32 %v764_v37, %v1377_v17 }
 0x20f   : > { %v768_v41 = vadd.f32 %v766_v39, %v1382_v25 }
 0x210   : > { %v769_v42 = vsub.f32 %v767_v30, %v1379_v21 }
 0x211   : > { %v770_v45 = vsub.f32 %v768_v41, %v1388_v31 }
 0x212   : > { %v771_v46 = vmul.f32 %v952_v40, %v769_v42 }
 0x213   : > { %v772_v43 = vmul.f32 %v953_v44, %v770_v45 }
 0x215   : > { %v779_v28 = vadd.f32 %v772_v43, %v771_v46 }
 0x217   : > { %780 = vadd.xlane.f32.xlu0 %v779_v28 }
 0x21b   : > { %795 = vadd.xlane.f32.xlu0 %v794_v47 }
 0x2a4   : > { %v781_v29 = vpop.xlane.xlu0 %780 }
 0x2a5   : > { %v782_v17 = vrot.slane %v781_v29, 4 }
 0x2a7   : > { %v783_v25 = vadd.f32 %v782_v17, %v781_v29 }
 0x2a8   : > { %v796_v21 = vpop.xlane.xlu0 %795 }
 0x2a9   : > { %v784_v35 = vrot.slane %v783_v25, 2  ;;  %v797_v31 = vrot.slane %v796_v21, 4 }
 0x2ab   : > { %v798_v38 = vadd.f32 %v797_v31, %v796_v21  ;;  %v785_v49 = vadd.f32 %v784_v35, %v783_v25 }
 0x2ad   : > { %v799_v50 = vrot.slane %v798_v38, 2  ;;  %v786_v51 = vrot.slane %v785_v49, 1 }
 0x2af   : > { %v800_v52 = vadd.f32 %v799_v50, %v798_v38  ;;  %v787_v54 = vadd.f32 %v786_v51, %v785_v49 }
 0x2b1   : > { %1006 = vpush %v787_v54  ;;  %v801_v55 = vrot.slane %v800_v52, 1 }
 0x2b3   : > { %v802_v53 = vadd.f32 %v801_v55, %v800_v52 }
 0x2b5   : > { %1008 = vpush %v802_v53 }
 0x2e2   : > { %s1007_s26 = spop %1006 }
 0x2e3   : > { %v789_v48 = vstv %s1007_s26 }
 0x2e4   : > { %v790_v57 = vadd.f32 %v789_v48, %v778_v56 }
 0x2e6   : > { %792 = vst.msk [vmem:[%s1421_s24] sm:$0x1] %vm791_vm5, %v790_v57  ;;  %s1009_s29 = spop %1008 }
 0x2e7   : > { %v804_v59 = vstv %s1009_s29 }
 0x2ed   : > { %v793_v58 = vld [vmem:[%s1421_s24] sm:$0x1] }
 0x2ee   : > { %v805_v60 = vadd.f32 %v804_v59, %v793_v58 }
 0x2f0   : > { %807 = vst.msk [vmem:[%s1421_s24] sm:$0x1] %vm806_vm6, %v805_v60 }
 0x2f1   : > { %1121 = shalt.err (!%p1118_p5)
}
 0x2f2   : > { %s1122_s13 = scalar_lea.hbm %s1432_s8, 16  ;;  %s1126_s22 = scalar_lea.hbm %s1486_s4, 32 }
 0x2f3   : > { %p1123_p6 = scmp.ne.s32.totalorder %s1432_s8, %s1122_s13  ;;  %p1127_p10 = scmp.lt.u32.totalorder %s1432_s8, %s1486_s4 }
 0x2f4   : > { %p1128_p11 = scmp.lt.u32.totalorder %s1126_s22, %s1122_s13  ;;  %p1130_p13 = scmp.lt.u32.totalorder %s1122_s13, %s1432_s8 }
 0x2f5   : > { %p1124_p7 = pnand %p1123_p6, %p1256_p4 }
 0x2f6   : > { %p1129_p12 = por %p1128_p11, %p1127_p10 }
 0x2f7   : > { %p1125_p9 = pneg %p1124_p7 }
 0x2f8   : > { %p1131_p0 = por %p1130_p13, %p1129_p12 }
 0x2fa   : > { %p1132_p1 = pnand %p1131_p0, %p1125_p9 }
 0x2fc   : > { %1135 = shalt.err (!%p1132_p1)
}
 0x2fd   : > { %1010 = dma.vmem_to_hbm [thread:$0]  (%p1256_p4), %s1434_s5, 16, %s1432_s8, %s809_s9  }
 0x2fe PF: > { %p1016_p2 = scmp.ge.s32.totalorder %s1186_s20, 2  ;;  %s833_s29 = sand.u32 1, %s1166_s15  }
 0x2ff   : > { %s834_s30 = scalar_lea.sflag [#allocation4], %s833_s29 }
 0x300   : > { %p1013_p3 = pnand %p1016_p2, %p1263_p8 }
 0x302   : > { %1161 = dma.done.wait (!%p1013_p3), %s834_s30, 16  }
 0x303   : > { %1163 = vsyncadd (!%p1013_p3), %s834_s30, 4294967280  ;;  %s17_s20 = sadd.s32 1, %s1186_s20   ;;  %s1489_s15 = smov %s1170_s16 }
 0x304   : > { %p14_p5 = scmp.ge.s32.totalorder %s17_s20, 4   ;;  %s1490_s16 = smov %s1174_s17 }
 0x305   : > { %s1491_s17 = smov %s1269_s28  ;;  %s1492_s18 = smov %s1182_s19 }
 0x306   : > { %s1493_s19 = smov %s1495_s23  ;;  %16 = sbr.rel (!%p14_p5) target bundleno = 4 (0x4), region = 85 }
 0x30d   :  { %838 = vsyncpa [#allocation4], 1 }
 0x30e   :  { %840 = vsyncpa [#allocation4 + $0x1], 1 }

</bundles_post_ra>
